<compile_context>
chip_gen: v5e
topology: v5e:2x2
jax: 0.10.0
libtpu: 0.0.40
codegen_flags: <defaults>
</compile_context>

<pallas_src>
import functools

import jax
import jax.numpy as jnp
from jax.experimental import pallas as pl
from jax.experimental.pallas import tpu as pltpu


_RING = 32                                  # in-flight row DMAs (large-table path)
_MAX_BLOCK_TOKENS = 256                     # token tile (matches v6e/v7x MXU height)
_OUT_VMEM_BUDGET = 8 * 1024 * 1024          # budget for the double-buffered output block
_FAST_PATH_VMEM_BUDGET = 12 * 1024 * 1024   # stay under v5e's 16 MiB default scoped VMEM


def _round_up(x, m):
    return ((x + m - 1) // m) * m


def _choose_block_tokens(num_tokens, d_embed, itemsize):
    """Token-block size: multiple of 8, VMEM-aware, >=2 grid steps when possible."""
    row_bytes = d_embed * itemsize
    # The pipelined output block is double-buffered: keep 2*t*row_bytes bounded
    # (matters for very wide rows on v5e / v7x's smaller per-TC VMEM).
    cap = max(8, (_OUT_VMEM_BUDGET // (2 * row_bytes)) // 8 * 8)
    t = min(_MAX_BLOCK_TOKENS, cap, _round_up(num_tokens, 8))
    # Give the "parallel" token-block axis at least two steps when there is
    # enough work so v7x can use both TensorCores (no-op on single-TC chips).
    if num_tokens > 8 and _round_up(num_tokens, t) == t:
        t = max(8, _round_up((num_tokens + 1) // 2, 8))
    return t


# ----------------------------------------------------------------------------
# Fast path: VMEM-resident table, one-hot gather on the MXU.
# ----------------------------------------------------------------------------
def _embedding_onehot_kernel(idx_ref, table_ref, out_ref, *, n_embed):
    """out = one_hot(idx, n_embed) @ table  (all operands VMEM-resident).

    idx_ref   : VMEM (t, 1) int32
    table_ref : VMEM (n_embed, d_embed)   (same block every step -> resident)
    out_ref   : VMEM (t, d_embed)
    """
    t = out_ref.shape[0]
    idx = jnp.clip(idx_ref[...], 0, n_embed - 1)                   # (t, 1)
    iota = jax.lax.broadcasted_iota(jnp.int32, (t, n_embed), 1)    # (t, n_embed)
    one_hot = (idx == iota).astype(table_ref.dtype)
    # HIGHEST precision keeps the f32 table values exact through the MXU
    # (one_hot entries are exactly 0/1, so the gather is bit-accurate enough).
    out_ref[...] = jnp.dot(
        one_hot, table_ref[...],
        preferred_element_type=jnp.float32,
        precision=jax.lax.Precision.HIGHEST,
    ).astype(out_ref.dtype)


def _lookup_onehot(flat_idx, table, t, padded):
    n_embed, d_embed = table.shape
    num_blocks = padded // t
    kernel = functools.partial(_embedding_onehot_kernel, n_embed=n_embed)
    return pl.pallas_call(
        kernel,
        out_shape=jax.ShapeDtypeStruct((padded, d_embed), table.dtype),
        grid=(num_blocks,),
        in_specs=[
            pl.BlockSpec((t, 1), lambda i: (i, 0)),              # per-block indices
            pl.BlockSpec((n_embed, d_embed), lambda i: (0, 0)),  # whole table, resident
        ],
        out_specs=pl.BlockSpec((t, d_embed), lambda i: (i, 0)),
        compiler_params=pltpu.CompilerParams(
            dimension_semantics=("parallel",),
        ),
    )(flat_idx.reshape(padded, 1), table)


# ----------------------------------------------------------------------------
# Large-table path: table in HBM, per-row DMA gather with a deep ring.
# ----------------------------------------------------------------------------
def _embedding_dma_kernel(idx_ref, table_hbm, out_ref, sem, *, block_tokens, n_embed):
    """Gather `block_tokens` table rows from HBM straight into the output block.

    idx_ref   : SMEM (1, block_tokens) int32   (this block's token indices)
    table_hbm : HBM  (n_embed, d_embed)        (memory_space=pl.ANY, manual DMA)
    out_ref   : VMEM (block_tokens, d_embed)   (pipelined output block)
    sem       : DMA semaphores, shape (_RING,)
    """
    ring = min(_RING, block_tokens)

    def read_row(r):
        # In-kernel clamp keeps every DMA in bounds (no wrapper-side clip pass).
        return jnp.clip(idx_ref[0, r], 0, n_embed - 1)

    def start(row, r, slot):
        pltpu.make_async_copy(
            table_hbm.at[pl.ds(row, 1), :],
            out_ref.at[pl.ds(r, 1), :],
            sem.at[slot],
        ).start()

    def wait(r, slot):
        # Invariant: the wait descriptor must describe the same byte count as
        # the matching start() — both are exactly one (1, d_embed) row.
        pltpu.make_async_copy(
            table_hbm.at[pl.ds(0, 1), :],
            out_ref.at[pl.ds(r, 1), :],
            sem.at[slot],
        ).wait()

    # Prime the ring (fully unrolled; trip count <= _RING is static).
    for r in range(ring):
        start(read_row(r), r, r % ring)

    # Steady state: read the next index BEFORE waiting (a .wait() breaks SMEM
    # sst->sld forwarding), then recycle the oldest slot.  ring == _RING (a
    # power of two) whenever this loop exists, so slot = r & (ring - 1).
    if block_tokens > ring:
        def body(r, carry):
            row = read_row(r)                       # hoisted above the wait
            slot = jnp.bitwise_and(r, ring - 1)
            wait(r - ring, slot)
            start(row, r, slot)
            return carry
        jax.lax.fori_loop(ring, block_tokens, body, 0, unroll=8)

    # Drain the remaining in-flight copies (fully unrolled).
    for i in range(ring):
        r = block_tokens - ring + i
        wait(r, r % ring)


def _lookup_dma(flat_idx, table, t, padded):
    n_embed, d_embed = table.shape
    num_blocks = padded // t
    kernel = functools.partial(_embedding_dma_kernel, block_tokens=t, n_embed=n_embed)
    return pl.pallas_call(
        kernel,
        out_shape=jax.ShapeDtypeStruct((padded, d_embed), table.dtype),
        grid=(num_blocks,),
        in_specs=[
            # Per-block index tile streamed into SMEM (pipelines with the grid;
            # avoids whole-array SMEM residency for very large token counts).
            pl.BlockSpec((1, t), lambda i: (i, 0),
                         memory_space=pltpu.MemorySpace.SMEM),
            # The table stays in HBM; rows are DMA'd directly into the output block.
            pl.BlockSpec(memory_space=pl.ANY),
        ],
        out_specs=pl.BlockSpec((t, d_embed), lambda i: (i, 0)),
        scratch_shapes=[pltpu.SemaphoreType.DMA((_RING,))],
        compiler_params=pltpu.CompilerParams(
            dimension_semantics=("parallel",),
        ),
    )(flat_idx.reshape(num_blocks, t), table)


# ----------------------------------------------------------------------------
# Dispatch wrapper (F.embedding equivalent).
# ----------------------------------------------------------------------------
def embedding_lookup(indices, table, *, force_path=None):
    """Pallas equivalent of F.embedding(indices, table).

    force_path: None (auto), "vmem" (one-hot MXU path), "dma" (HBM gather path).
    """
    n_embed, d_embed = table.shape
    itemsize = jnp.dtype(table.dtype).itemsize

    flat_idx = indices.reshape(-1).astype(jnp.int32)
    num_tokens = flat_idx.shape[0]

    t = _choose_block_tokens(num_tokens, d_embed, itemsize)
    padded = _round_up(num_tokens, t)
    if padded != num_tokens:
        flat_idx = jnp.pad(flat_idx, (0, padded - num_tokens))

    # Small-table fast path: double-buffered table + one-hot + double-buffered
    # output block must fit comfortably under every generation's default
    # scoped-VMEM limit (16 MiB on v5e, 32 MiB on v6e/v7x).
    fast_bytes = (2 * n_embed * d_embed * itemsize      # table (double-buffered)
                  + t * n_embed * 4                     # one-hot block
                  + 2 * t * d_embed * itemsize          # output block (double-buffered)
                  + 2 * t * 4)                          # index block
    use_fast = fast_bytes <= _FAST_PATH_VMEM_BUDGET
    if force_path == "vmem":
        use_fast = True
    elif force_path == "dma":
        use_fast = False

    # Note: lane-dense output (d_embed a multiple of 128) gives unmasked stores
    # and full-width writeback; callers with narrow d_embed should prefer the
    # fast path (the budget check routes small tables there automatically).
    if use_fast:
        out_flat = _lookup_onehot(flat_idx, table, t, padded)
    else:
        out_flat = _lookup_dma(flat_idx, table, t, padded)

    if padded != num_tokens:
        out_flat = out_flat[:num_tokens]
    return out_flat.reshape(*indices.shape, d_embed)


class EmbeddingLookup:
    """Mirror of the PyTorch module: holds a normal-initialized lookup table."""

    def __init__(self, n_embed, d_embed, key):
        # init.normal_(self.lookup_table) -> standard normal, deterministic here.
        self.lookup_table = jax.random.normal(key, (n_embed, d_embed), jnp.float32)

    def __call__(self, inputs):
        return embedding_lookup(inputs, self.lookup_table)


if __name__ == "__main__":
    key = jax.random.PRNGKey(0)
    k_table, k_idx = jax.random.split(key)

    n_embed, d_embed = 64, 128          # small, lane-aligned embedding dim
    batch, seq = 2, 8

    module = EmbeddingLookup(n_embed, d_embed, k_table)
    inputs = jax.random.randint(k_idx, (batch, seq), 0, n_embed, dtype=jnp.int32)

    # Reference semantics of F.embedding (plain-JAX gather).
    ref = jnp.take(module.lookup_table, inputs, axis=0)

    # 1) Default dispatch -> small-table fast path (VMEM one-hot MXU gather).
    out_fast = jax.block_until_ready(module(inputs))
    assert out_fast.shape == (batch, seq, d_embed)
    assert out_fast.dtype == module.lookup_table.dtype
    assert jnp.allclose(out_fast, ref, rtol=1e-5, atol=1e-5)

    # 2) Force the large-table path (HBM table + ring of per-row DMAs) too.
    out_dma = jax.block_until_ready(
        embedding_lookup(inputs, module.lookup_table, force_path="dma"))
    assert out_dma.shape == (batch, seq, d_embed)
    assert jnp.allclose(out_dma, ref)

    print("KERNEL_OK")
</pallas_src>

<mosaic_0001>
module attributes {stable_mosaic.version = 11 : i64} {
  func.func @_embedding_onehot_kernel(%arg0: i32, %arg1: memref<8x1xi32, #tpu.memory_space<vmem>>, %arg2: memref<64x128xf32, #tpu.memory_space<vmem>>, %arg3: memref<8x128xf32, #tpu.memory_space<vmem>>) attributes {dimension_semantics = [#tpu.dimension_semantics<parallel>], iteration_bounds = array<i64: 2>, scalar_prefetch = 0 : i64, scratch_operands = 0 : i64, tpu.core_type = #tpu.core_type<tc>, window_params = [{transform_indices = @transform_0, window_bounds = array<i64: 8, 1>}, {pipeline_mode = #tpu.pipeline_mode<synchronous>, transform_indices = @transform_1, window_bounds = array<i64: 64, 128>}, {transform_indices = @transform_2, window_bounds = array<i64: 8, 128>}]} {
    %c0 = arith.constant 0 : index
    %c0_0 = arith.constant 0 : index
    %0 = vector.load %arg1[%c0, %c0_0] : memref<8x1xi32, #tpu.memory_space<vmem>>, vector<8x1xi32>
    %c0_i32 = arith.constant 0 : i32
    %c63_i32 = arith.constant 63 : i32
    %1 = vector.broadcast %c0_i32 : i32 to vector<8x1xi32>
    %2 = arith.maxsi %1, %0 : vector<8x1xi32>
    %3 = vector.broadcast %c63_i32 : i32 to vector<8x1xi32>
    %4 = arith.minsi %3, %2 : vector<8x1xi32>
    %5 = tpu.iota {dimensions = array<i32: 1>} : vector<8x64xi32>
    %6 = vector.broadcast %4 : vector<8x1xi32> to vector<8x64xi32>
    %7 = arith.cmpi eq, %6, %5 : vector<8x64xi32>
    %8 = arith.extui %7 : vector<8x64xi1> to vector<8x64xi32>
    %9 = arith.sitofp %8 : vector<8x64xi32> to vector<8x64xf32>
    %c0_1 = arith.constant 0 : index
    %c0_2 = arith.constant 0 : index
    %10 = vector.load %arg2[%c0_1, %c0_2] : memref<64x128xf32, #tpu.memory_space<vmem>>, vector<64x128xf32>
    %cst = arith.constant dense<0.000000e+00> : vector<8x128xf32>
    %11 = tpu.matmul %9, %10, %cst {dimension_numbers = #tpu.dot_dimension_numbers<[1], [0], [0], [1], [0, 0, 1, 1], [], []>, precision = #tpu.contract_precision<fp32>} : vector<8x64xf32>, vector<64x128xf32>, vector<8x128xf32> -> vector<8x128xf32>
    %c0_3 = arith.constant 0 : index
    %c0_4 = arith.constant 0 : index
    %12 = vector.load %arg3[%c0_3, %c0_4] : memref<8x128xf32, #tpu.memory_space<vmem>>, vector<8x128xf32>
    tpu.vector_store %arg3[%c0_3, %c0_4], %11 {strides = array<i32>} : memref<8x128xf32, #tpu.memory_space<vmem>>, vector<8x128xf32>,
    return
  }
  func.func @transform_0(%arg0: i32) -> (i32, i32) {
    %c0_i32 = arith.constant 0 : i32
    %c0_i32_0 = arith.constant 0 : i32
    return %arg0, %c0_i32 : i32, i32
  }
  func.func @transform_1(%arg0: i32) -> (i32, i32) {
    %c0_i32 = arith.constant 0 : i32
    %c0_i32_0 = arith.constant 0 : i32
    %c0_i32_1 = arith.constant 0 : i32
    return %c0_i32, %c0_i32_0 : i32, i32
  }
  func.func @transform_2(%arg0: i32) -> (i32, i32) {
    %c0_i32 = arith.constant 0 : i32
    %c0_i32_0 = arith.constant 0 : i32
    return %arg0, %c0_i32 : i32, i32
  }
}

</mosaic_0001>

<bundles_post_ra>
// kernel: tpu_custom_call.1
= control target key start
LH: loop header
LB: loop body
LE: loop exit
PB: predicated region body
PF: predicated region fallthrough
CT: control target
= control target key end

     0   :  { %7 = vsyncpa [#allocation3], 0  ;;  %s868_s0 = inlined_call_operand.vmem [shape: s32[16,1], index: 0, kind: input, shape index: {}]   ;;  %s869_s1 = inlined_call_operand.hbm [shape: f32[64,128], index: 1, kind: input, shape index: {}]   ;;  %s870_s2 = inlined_call_operand.hbm [shape: f32[16,128], index: 2, kind: output, shape index: {}]  }
   0x1   :  { %8 = vsyncpa [#allocation4], 0 }
   0x2   :  { %10 = vsyncpa [#allocation4 + $0x1], 0  ;;  %s695_s9 = smov 0   ;;  %s697_s10 = smov 0  }
   0x3   :  { %s699_s11 = smov 0   ;;  %s701_s12 = smov 0  }
   0x4 LB: > { %s716_s13 = sadd.s32 4294967295, %s673_s12   ;;  %s506_s14 = sadd.s32 4294967294, %s673_s12   ;;  %s673_s12 = sphi %s701_s12, %s876_s12   ;;  %s669_s11 = sphi %s699_s11, %s875_s11   ;;  %s665_s10 = sphi %s697_s10, %s874_s10   ;;  %s661_s9 = sphi %s695_s9, %s873_s9  }
   0x5   : > { %s720_s15 = sadd.s32 1, %s673_s12   ;;  %s70_s16 = sadd.s32 1, %s669_s11 }
   0x6   : > { %s67_s17 = ssub.s32 %s673_s12, %s720_s15  ;;  %p80_p0 = scmp.ne.s32.totalorder %s669_s11, %s665_s10 }
   0x7   : > { %p68_p1 = scmp.eq.s32.totalorder %s67_s17, 0  ;;  %p81_p2 = scmp.eq.s32.totalorder %s716_s13, 1 }
   0x8   : > { %p86_p3 = scmp.ne.s32.totalorder %s665_s10, %s661_s9  ;;  %p87_p4 = scmp.eq.s32.totalorder %s506_s14, 1 }
   0x9   : > { %s731_s18 = scalar_select %p68_p1, %s669_s11, %s70_s16  }
   0xa   : > { %p733_p5 = por %p81_p2, %p80_p0  ;;  %p737_p6 = por %p87_p4, %p86_p3 }
   0xb   : > { %p507_p7 = scmp.ge.s32.totalorder %s673_s12, 1  ;;  %p94_p8 = scmp.lt.s32.totalorder %s673_s12, 3 }
   0xc   : > { %p536_p9 = scmp.eq.s32.totalorder %s716_s13, 0  ;;  %s105_s23 = sshll.u32 %s869_s1, 4  ;;  %s106_s23 = int_to_ptr.hbm [resolvable:$true] %s105_s23 }
   0xd   : > { %p95_p10 = pnand %p507_p7, %p94_p8  ;;  %s675_s24 = smov [#allocation2]  }
   0xe   : > { %s107_s25 = sshll.u32 %s675_s24, 4  ;;  %s676_s26 = smov 128   ;;  %s108_s25 = int_to_ptr.vmem [resolvable:$true] %s107_s25 }
   0xf   : > { %p528_p11 = pneg %p95_p10  ;;  %s677_s27 = smov 8  }
  0x10   : > { %130 = sbr.rel (%p95_p10) target bundleno = 300 (0x12c), region = 28 }
  0x11   : > { %p529_p12 = pnand %p536_p9, %p528_p11 }
  0x13   : > { %531 = dma.hbm_to_vmem [thread:$0]  (!%p529_p12), %s106_s23, 1024, %s108_s25, [#allocation3], %s676_s26, %s676_s26, %s677_s27  }
  0x15   : > { %652 = dma.done.wait (%p536_p9), [#allocation3], 1024  }
  0x16   : > { %654 = vsyncadd (%p536_p9), [#allocation3], 4294966272  ;;  %p152_p13 = scmp.lt.s32.totalorder %s716_s13, 1  ;;  %v678_v0 = vmov 0   ;;  %v176_v2 = vld [vmem:[#allocation2 + $0x38] sm:$0xff]  ;;  %v175_v3 = vld [vmem:[#allocation2 + $0x30] sm:$0xff]  ;;  %v161_v52 = vlaneseq }
  0x17   : > { %576 = vset.pattern.permute.xlu0 %v678_v0  ;;  %v758_v4 = vand.u32 4294901760, %v176_v2  ;;  %v760_v5 = vand.u32 4294901760, %v175_v3  ;;  %v174_v6 = vld [vmem:[#allocation2 + $0x28] sm:$0xff]  ;;  %v173_v7 = vld [vmem:[#allocation2 + $0x20] sm:$0xff]  ;;  %v172_v8 = vld [vmem:[#allocation2 + $0x18] sm:$0xff]  ;;  %vm177_vm2 = vcmask 523264  }
  0x18   : > { %s153_s28 = scalar_select %p152_p13, %s716_s13, 1  ;;  %v762_v10 = vand.u32 4294901760, %v174_v6  ;;  %v764_v11 = vand.u32 4294901760, %v173_v7  ;;  %v766_v12 = vand.u32 4294901760, %v172_v8  ;;  %v171_v13 = vld [vmem:[#allocation2 + $0x10] sm:$0xff]  ;;  %v170_v14 = vld [vmem:[#allocation2 + $0x8] sm:$0xff] }
  0x19   : > { %v769_v15 = vsub.f32 %v176_v2, %v758_v4  ;;  %v772_v16 = vsub.f32 %v175_v3, %v760_v5  ;;  %190 = vmatpush.msra.mxu0 %v758_v4  ;;  %v775_v17 = vand.u32 4294901760, %v171_v13  ;;  %322 = vmatpush.msra.mxu3 %v758_v4  ;;  %v169_v18 = vld [vmem:[#allocation2] sm:$0xff]  ;;  %v793_v26 = vand.u32 4294901760, %v170_v14  ;;  %s149_s5 = sand.u32 1, %s665_s10   ;;  %s519_s7 = sshll.u32 %s716_s13, 3 }
  0x1a   : > { %s513_s29 = sshll.u32 %s153_s28, 3  ;;  %v779_v20 = vsub.f32 %v174_v6, %v762_v10  ;;  %v782_v21 = vsub.f32 %v173_v7, %v764_v11  ;;  %v785_v22 = vsub.f32 %v172_v8, %v766_v12  ;;  %v798_v29 = vand.u32 4294901760, %v169_v18  ;;  %s512_s6 = sshll.u32 %s149_s5, 3 }
  0x1b   : > { %s155_s4 = scalar_lea.vmem %s868_s0, %s513_s29  ;;  %v224_v23 = vand.u32 4294901760, %v769_v15  ;;  %v230_v24 = vand.u32 4294901760, %v772_v16  ;;  %v790_v25 = vsub.f32 %v171_v13, %v775_v17  ;;  %285 = vmatpush.msra.mxu2 %v769_v15  ;;  %192 = vmatpush.msra.mxu0 %v760_v5  ;;  %v259_v33 = vsub.f32 %v170_v14, %v793_v26  ;;  %s430_s16 = scalar_lea.hbm %s870_s2, %s519_s7 }
  0x1c   : > { %v156_v1 = vld [vmem:[%s155_s4] sm:$0xff]  ;;  %v236_v27 = vand.u32 4294901760, %v779_v20  ;;  %v242_v28 = vand.u32 4294901760, %v782_v21  ;;  %324 = vmatpush.msra.mxu3 %v760_v5  ;;  %v248_v32 = vand.u32 4294901760, %v785_v22  ;;  %v265_v39 = vsub.f32 %v169_v18, %v798_v29  ;;  %s151_s17 = scalar_lea.vmem [#allocation5], %s512_s6  ;;  %s434_s22 = sshll.u32 %s430_s16, 4  ;;  %s435_s22 = int_to_ptr.hbm [resolvable:$true] %s434_s22 }
  0x1d   : > { %vm157_vm0 = vcmp.gt.s32.totalorder %v156_v1, 0  ;;  %v225_v30 = vsub.f32 %v769_v15, %v224_v23  ;;  %v231_v31 = vsub.f32 %v772_v16, %v230_v24  ;;  %288 = vmatpush.msra.mxu2 %v772_v16  ;;  %v254_v35 = vand.u32 4294901760, %v790_v25  ;;  %194 = vmatpush.msra.mxu0 %v762_v10  ;;  %s432_s21 = sshll.u32 %s151_s17, 4  ;;  %s420_s23 = scalar_lea.sflag [#allocation4], %s149_s5  ;;  %s433_s21 = int_to_ptr.vmem [resolvable:$true] %s432_s21 }
  0x1e   : > { %v158_v9 = vsel %vm157_vm0, %v156_v1, 0  ;;  %v237_v34 = vsub.f32 %v779_v20, %v236_v27  ;;  %v243_v38 = vsub.f32 %v782_v21, %v242_v28  ;;  %326 = vmatpush.msra.mxu3 %v762_v10  ;;  %v249_v41 = vsub.f32 %v785_v22, %v248_v32  ;;  %s621_s13 = sshra.s32 %s435_s22, 4  ;;  %s627_s27 = scalar_lea.hbm %s870_s2, 16  ;;  %s622_s13 = int_to_ptr.hbm [resolvable:$true] %s621_s13 }
  0x1f   : > { %vm159_vm1 = vcmp.lt.s32.totalorder %v158_v9, 63  ;;  %v226_v36 = vand.u32 4294901760, %v225_v30  ;;  %v232_v37 = vand.u32 4294901760, %v231_v31  ;;  %291 = vmatpush.msra.mxu2 %v779_v20  ;;  %196 = vmatpush.msra.mxu0 %v764_v11  ;;  %v260_v42 = vand.u32 4294901760, %v259_v33  ;;  %s623_s24 = scalar_lea.hbm %s622_s13, 8  ;;  %p628_p3 = scmp.lt.s32.totalorder %s622_s13, %s870_s2 }
  0x20   : > { %v160_v19 = vsel %vm159_vm1, %v158_v9, 63  ;;  %v238_v40 = vand.u32 4294901760, %v237_v34  ;;  %328 = vmatpush.msra.mxu3 %v764_v11  ;;  %v244_v43 = vand.u32 4294901760, %v243_v38  ;;  %v255_v44 = vsub.f32 %v790_v25, %v254_v35  ;;  %p624_p0 = scmp.ne.s32.totalorder %s622_s13, %s623_s24  ;;  %p629_p4 = scmp.lt.s32.totalorder %s627_s27, %s623_s24 }
  0x21   : > { %164 = vperm.xlu0 %576, %v160_v19   ;;  %227 = vmatpush.msra.mxu1 %v226_v36  ;;  %v266_v45 = vand.u32 4294901760, %v265_v39  ;;  %v250_v46 = vand.u32 4294901760, %v249_v41  ;;  %v261_v47 = vsub.f32 %v259_v33, %v260_v42  ;;  %v162_v53 = vand.u32 127, %v161_v52 }
  0x22   : > { %294 = vmatpush.msra.mxu2 %v782_v21  ;;  %198 = vmatpush.msra.mxu0 %v766_v12  ;;  %v256_v48 = vand.u32 4294901760, %v255_v44  ;;  %v679_v55 = vmov 0.0   ;;  %p625_p1 = pnand %p624_p0, %p733_p5  ;;  %p630_p7 = por %p629_p4, %p628_p3 }
  0x23   : > { %233 = vmatpush.msra.mxu1 %v232_v37  ;;  %330 = vmatpush.msra.mxu3 %v766_v12  ;;  %v267_v49 = vsub.f32 %v265_v39, %v266_v45  ;;  %v262_v50 = vand.u32 4294901760, %v261_v47 }
  0x24   : > { %297 = vmatpush.msra.mxu2 %v785_v22  ;;  %200 = vmatpush.msra.mxu0 %v775_v17  ;;  %p626_p2 = pneg %p625_p1 }
  0x25   : > { %239 = vmatpush.msra.mxu1 %v238_v40  ;;  %332 = vmatpush.msra.mxu3 %v775_v17  ;;  %v268_v51 = vand.u32 4294901760, %v267_v49 }
  0x26   : > { %300 = vmatpush.msra.mxu2 %v790_v25  ;;  %202 = vmatpush.msra.mxu0 %v793_v26  ;;  %p631_p8 = pnand %p630_p7, %p626_p2 }
  0x27   : > { %245 = vmatpush.msra.mxu1 %v244_v43  ;;  %334 = vmatpush.msra.mxu3 %v793_v26 }
  0x28   : > { %303 = vmatpush.msra.mxu2 %v259_v33  ;;  %204 = vmatpush.msra.mxu0 %v798_v29 }
  0x29   : > { %251 = vmatpush.msra.mxu1 %v250_v46  ;;  %336 = vmatpush.msra.mxu3 %v798_v29 }
  0x2a   : > { %306 = vmatpush.msra.mxu2 %v265_v39  ;;  %355 = vmatpush.msrb.mxu0 %v224_v23 }
  0x2b   : > { %257 = vmatpush.msra.mxu1 %v256_v48 }
  0x2c   : > { %359 = vmatpush.msrb.mxu0 %v230_v24 }
  0x2d   : > { %263 = vmatpush.msra.mxu1 %v262_v50 }
  0x2e   : > { %363 = vmatpush.msrb.mxu0 %v236_v27 }
  0x2f   : > { %269 = vmatpush.msra.mxu1 %v268_v51 }
  0x30   : > { %367 = vmatpush.msrb.mxu0 %v242_v28 }
  0x31   : > { %398 = vmatpush.msrb.mxu1 %v758_v4 }
  0x32   : > { %371 = vmatpush.msrb.mxu0 %v248_v32 }
  0x33   : > { %400 = vmatpush.msrb.mxu1 %v760_v5 }
  0x34   : > { %375 = vmatpush.msrb.mxu0 %v254_v35 }
  0x35   : > { %402 = vmatpush.msrb.mxu1 %v762_v10 }
  0x36   : > { %379 = vmatpush.msrb.mxu0 %v260_v42 }
  0x37   : > { %404 = vmatpush.msrb.mxu1 %v764_v11 }
  0x38   : > { %383 = vmatpush.msrb.mxu0 %v266_v45 }
  0x39   : > { %406 = vmatpush.msrb.mxu1 %v766_v12 }
  0x3b   : > { %408 = vmatpush.msrb.mxu1 %v775_v17 }
  0x3d   : > { %410 = vmatpush.msrb.mxu1 %v793_v26 }
  0x3f   : > { %412 = vmatpush.msrb.mxu1 %v798_v29 }
  0x93   : > { %v165_v54 = vpop.permute.xlu0 %164 }
  0x94   : > { %vm166_vm3 = vcmp.eq.s32.totalorder %v165_v54, %v162_v53 }
  0x95   : > { %v514_v56 = vsel %vm166_vm3, 1.0, %v679_v55 }
  0x96   : > { %515 = vmatmul.msk.f32.vlgmr.msra.gmra.mxu1 %vm177_vm2, %v514_v56  ;;  %v179_v57 = vsel %vm177_vm2, %v514_v56, 0 }
  0x97   : > { %v206_v58 = vsub.f32 %v179_v57, %v179_v57 }
  0x99   : > { %309 = vmatmul.f32.vlgmr.msra.gmra.mxu2 %v206_v58  ;;  %v207_v59 = vand.u32 4294901760, %v206_v58 }
  0x9b   : > { %340 = vmatmul.f32.vlgmr.msra.gmra.mxu3 %v207_v59  ;;  %v208_v60 = vsub.f32 %v206_v58, %v207_v59 }
  0x9d   : > { %v209_v61 = vand.u32 4294901760, %v208_v60 }
  0x9e   : > { %517 = vmatmul.msk.f32.vlgmr.msrb.gmra.mxu1 %vm177_vm2, %v514_v56 }
  0x9f   : > { %210 = vmatmul.f32.vlgmr.msra.gmra.mxu0 %v209_v61 }
  0xa7   : > { %516 = vmatmul.msk.f32.vlgmr.msrb.gmra.mxu0 %vm177_vm2, %v514_v56 }
 0x113   : > { %v272_v62 = vpop.f32.mrf.mxu1 }
 0x11b   : > { %v415_v7 = vpop.f32.mrf.mxu1 }
 0x11c   : > { %v211_v63 = vpop.f32.mrf.mxu0  ;;  %v310_v1 = vpop.f32.mrf.mxu2 }
 0x11d   : > { %v273_v0 = vadd.f32 %v272_v62, %v211_v63 }
 0x11e   : > { %v341_v3 = vpop.f32.mrf.mxu3 }
 0x11f   : > { %v311_v2 = vadd.f32 %v310_v1, %v273_v0 }
 0x121   : > { %v342_v4 = vadd.f32 %v341_v3, %v311_v2 }
 0x124   : > { %v386_v5 = vpop.f32.mrf.mxu0 }
 0x125   : > { %v387_v6 = vadd.f32 %v386_v5, %v342_v4 }
 0x127   : > { %v416_v8 = vadd.f32 %v415_v7, %v387_v6 }
 0x129   : > { %418 = vst [vmem:[%s151_s17] sm:$0xff] %v416_v8 }
 0x12a   : > { %634 = shalt.err (!%p631_p8)
}
 0x12b   : > { %526 = dma.vmem_to_hbm [thread:$0]  (%p733_p5), %s433_s21, 128, %s435_s22, %s420_s23  }
 0x12c PF: > { %p538_p9 = scmp.ge.s32.totalorder %s673_s12, 2  ;;  %s446_s30 = sand.u32 1, %s661_s9  }
 0x12d   : > { %s447_s3 = scalar_lea.sflag [#allocation4], %s446_s30 }
 0x12e   : > { %p533_p10 = pnand %p538_p9, %p737_p6 }
 0x130   : > { %p534_p11 = pneg %p533_p10 }
 0x132   : > { %656 = dma.done.wait (%p534_p11), %s447_s3, 128  }
 0x133   : > { %658 = vsyncadd (%p534_p11), %s447_s3, 4294967168  ;;  %p13_p12 = scmp.ge.s32.totalorder %s720_s15, 4   ;;  %s873_s9 = smov %s665_s10 }
 0x134   : > { %s874_s10 = smov %s669_s11  ;;  %s875_s11 = smov %s731_s18 }
 0x135   : > { %s876_s12 = smov %s720_s15  ;;  %15 = sbr.rel (!%p13_p12) target bundleno = 4 (0x4), region = 68 }
 0x13a   :  { %453 = vsyncpa [#allocation3], 1 }
 0x13b   :  { %455 = vsyncpa [#allocation3 + $0x1], 1 }
 0x13c   :  { %456 = vsyncpa [#allocation4], 1 }
 0x13d   :  { %458 = vsyncpa [#allocation4 + $0x1], 1 }

</bundles_post_ra>
